<compile_context>
chip_gen: v6e
topology: v6e:2x2x1
jax: 0.10.0
libtpu: 0.0.40
codegen_flags: <defaults>
</compile_context>

<pallas_src>
import math

import jax
import jax.numpy as jnp
from jax.experimental import pallas as pl
from jax.experimental.pallas import tpu as pltpu


_TARGET_STEP_BYTES = 8 << 20        # ~sweet-spot live-block bytes per grid step
_TARGET_MIN_DMA_BYTES = 512 << 10   # aim for >=512 KiB per-input DMA bursts
_MIN_GRID_STEPS = 4                 # give v7x's two TensorCores >=2 steps each
_MIN_STEP_BYTES = 2 << 20           # don't split steps below ~2 MiB live blocks
_MIN_PALLAS_BYTES = 2 << 20         # below ~2 MiB, XLA's fusable concat wins
_VMEM_FALLBACK_CAP = 64 << 20       # conservative (v7x) if HW query fails


# ---------------------------------------------------------------------------
# Kernel: copy each flattened input block into its static slab of the output.
# ---------------------------------------------------------------------------
def _concat_rows_kernel(*refs):
    """refs = (*in_refs, out_ref); each is a (row_tile, L_i) VMEM block."""
    in_refs, out_ref = refs[:-1], refs[-1]
    off = 0
    for r in in_refs:
        li = r.shape[1]
        # Static-offset, lane-dense copy.  Note (v5e): if the running offsets
        # are not multiples of 128 lanes, these lower to masked vst.msk plus
        # cross-lane relayout at each input boundary; the kernel stays DMA
        # bound on v6e/v7x, but on v5e callers should prefer 128-aligned
        # payloads (e.g. channel counts * H*W divisible by 128) when possible.
        out_ref[:, off:off + li] = r[...]
        off += li


# ---------------------------------------------------------------------------
# Sizing helpers
# ---------------------------------------------------------------------------
_TPU_VMEM_CAP_CACHE = [None]


def _vmem_capacity_bytes():
    if _TPU_VMEM_CAP_CACHE[0] is None:
        try:
            _TPU_VMEM_CAP_CACHE[0] = int(pltpu.get_tpu_info().vmem_capacity_bytes)
        except Exception:  # pragma: no cover - non-TPU / query failure
            _TPU_VMEM_CAP_CACHE[0] = _VMEM_FALLBACK_CAP
    return _TPU_VMEM_CAP_CACHE[0]


def _sublane_multiple(dtype):
    """Native sublane tile: 8 rows for 32-bit, 16 for bf16, 32 for int8/fp8."""
    itemsize = jnp.dtype(dtype).itemsize
    return max(8, 32 // max(1, itemsize))


def _pick_row_tile(rows, payloads, itemsize, budget_bytes, sub):
    """Rows per grid step (a multiple of `sub`, or the full row extent)."""
    total = sum(payloads)
    step_row_bytes = 2 * total * itemsize          # input blocks + output block
    max_fit = budget_bytes // (2 * step_row_bytes)  # 2x: double-buffered blocks
    if max_fit < 1:
        return None
    min_payload_bytes = min(payloads) * itemsize
    want = max(1,
               _TARGET_STEP_BYTES // step_row_bytes,
               _TARGET_MIN_DMA_BYTES // min_payload_bytes)
    tile = min(rows, max_fit, want)
    if tile >= rows:
        return rows
    if tile >= sub:
        return (tile // sub) * sub
    if max_fit >= sub:
        return sub
    return None


def _split_for_megacore(rows, row_tile, sub, step_row_bytes):
    """Shrink the tile so the grid has >= _MIN_GRID_STEPS steps (v7x: 2 TCs),
    without dropping below one sublane tile or tiny per-step DMAs."""
    if row_tile <= sub:
        return row_tile
    while pl.cdiv(rows, row_tile) < _MIN_GRID_STEPS:
        cand = ((row_tile // 2) // sub) * sub
        if cand < sub or cand * step_row_bytes < _MIN_STEP_BYTES:
            break
        row_tile = cand
    return row_tile


# ---------------------------------------------------------------------------
# Wrapper
# ---------------------------------------------------------------------------
def concat_pallas(xs, axis=1, row_tile=None):
    """torch.cat(xs, axis) for row-major JAX arrays via a Pallas TPU kernel."""
    xs = list(xs)
    if len(xs) == 1:
        return xs[0]

    rank = xs[0].ndim
    axis = axis % rank
    dtype = xs[0].dtype
    lead = xs[0].shape[:axis]
    tail = xs[0].shape[axis + 1:]
    compatible = all(
        x.ndim == rank and x.dtype == dtype
        and x.shape[:axis] == lead and x.shape[axis + 1:] == tail
        for x in xs)
    if not compatible:
        # NOTE: jnp.concatenate silently type-promotes mixed dtypes, whereas
        # torch.cat raises -- a semantic (not numeric) divergence.
        # TODO(synk): mixed dtypes / mismatched shapes fall back to plain JAX.
        return jnp.concatenate(xs, axis=axis)

    rows = int(math.prod(lead)) if lead else 1
    payloads = [int(math.prod(x.shape[axis:])) for x in xs]
    total = sum(payloads)
    out_shape_nd = lead + (sum(x.shape[axis] for x in xs),) + tail
    if rows == 0 or total == 0 or min(payloads) == 0:
        return jnp.concatenate(xs, axis=axis)

    itemsize = jnp.dtype(dtype).itemsize
    sub = _sublane_multiple(dtype)
    step_row_bytes = 2 * total * itemsize  # per-row bytes resident (in + out)

    if rows < sub and row_tile is None:
        # Degenerate sublane extent (rows==1 / axis=0 / batch-1 NCHW): an
        # unpipelined partial-sublane Pallas block loses to XLA's DMA-based
        # concat, which also keeps fusion opportunities.
        # TODO(synk): replace with a chunked manual-DMA path
        # (pl.ANY refs + pltpu.make_async_copy, HBM->VMEM->HBM double-buffered)
        # to hit the HBM roofline regardless of row shape.
        return jnp.concatenate(xs, axis=axis)

    cap = _vmem_capacity_bytes()
    # ~0.75x capacity, but always leave >=16 MiB for Mosaic internal scratch
    # (matters on v7x's 64 MiB; v5e/v6e get the full 96 MiB budget).
    budget = max(32 << 20, min(int(cap * 0.75), cap - (16 << 20)))

    if row_tile is None:
        row_tile = _pick_row_tile(rows, payloads, itemsize, budget, sub)
        if row_tile is not None:
            row_tile = _split_for_megacore(rows, row_tile, sub, step_row_bytes)
    if row_tile is None:
        # TODO(synk): rows too wide to double-buffer in VMEM should use a
        # manual chunked-DMA path instead of falling back to XLA.
        return jnp.concatenate(xs, axis=axis)

    flats = [x.reshape(rows, li) for x, li in zip(xs, payloads)]
    grid = (pl.cdiv(rows, row_tile),)
    in_specs = [pl.BlockSpec((row_tile, li), lambda i: (i, 0)) for li in payloads]
    out_specs = pl.BlockSpec((row_tile, total), lambda i: (i, 0))

    needed = 2 * row_tile * step_row_bytes          # double-buffered residency
    vmem_limit = max(needed + (4 << 20), 32 << 20)
    vmem_limit = int(min(vmem_limit, cap - (8 << 20)))

    cost = pl.CostEstimate(flops=0, transcendentals=0,
                           bytes_accessed=2 * rows * total * itemsize)

    out2d = pl.pallas_call(
        _concat_rows_kernel,
        out_shape=jax.ShapeDtypeStruct((rows, total), dtype),
        grid=grid,
        in_specs=in_specs,
        out_specs=out_specs,
        compiler_params=pltpu.CompilerParams(
            dimension_semantics=("parallel",),
            vmem_limit_bytes=vmem_limit),
        cost_estimate=cost,
    )(*flats)
    return out2d.reshape(out_shape_nd)


class Concat:
    """JAX/Pallas equivalent of models.common.Concat (torch.cat(x, dim))."""

    def __init__(self, dimension=1, min_pallas_bytes=_MIN_PALLAS_BYTES):
        self.d = dimension
        self.min_pallas_bytes = min_pallas_bytes

    def __call__(self, x):
        xs = list(x)
        total_bytes = sum(
            int(math.prod(t.shape)) * jnp.dtype(t.dtype).itemsize for t in xs)
        if total_bytes >= self.min_pallas_bytes:
            return concat_pallas(xs, axis=self.d)
        # Small concat: pallas_call launch/DMA-setup overhead dominates and the
        # pallas_call boundary blocks XLA producer/consumer fusion.
        return jnp.concatenate(xs, axis=self.d)


if __name__ == "__main__":
    key = jax.random.PRNGKey(0)
    k1, k2, k3, k4, k5, k6, k7, k8, k9 = jax.random.split(key, 9)

    # Test 1: NCHW channel concat (the module's hot path), forced Pallas path.
    x1 = jax.random.normal(k1, (8, 4, 16, 16), dtype=jnp.float32)
    x2 = jax.random.normal(k2, (8, 6, 16, 16), dtype=jnp.float32)
    x3 = jax.random.normal(k3, (8, 2, 16, 16), dtype=jnp.float32)
    module = Concat(dimension=1, min_pallas_bytes=0)
    out1 = jax.block_until_ready(module([x1, x2, x3]))
    ref1 = jnp.concatenate([x1, x2, x3], axis=1)
    assert out1.shape == (8, 12, 16, 16), out1.shape
    assert out1.dtype == jnp.float32
    assert bool(jnp.array_equal(out1, ref1)), "Pallas concat mismatch (test 1)"

    # Test 2: bf16 with an explicit dtype-aware row tile (16 = native bf16
    # sublane tile) -> multi-step pipelined grid.
    y1 = jax.random.normal(k4, (32, 8, 16, 16), dtype=jnp.bfloat16)
    y2 = jax.random.normal(k5, (32, 8, 16, 16), dtype=jnp.bfloat16)
    out2 = jax.block_until_ready(concat_pallas([y1, y2], axis=1, row_tile=16))
    ref2 = jnp.concatenate([y1, y2], axis=1)
    assert bool(jnp.array_equal(out2, ref2)), "Pallas concat mismatch (test 2)"

    # Test 3: auto tiling on a mid-size concat -> megacore split gives >=2
    # grid steps so both v7x TensorCores get work.
    z1 = jax.random.normal(k6, (64, 16, 16, 16), dtype=jnp.float32)
    z2 = jax.random.normal(k7, (64, 16, 16, 16), dtype=jnp.float32)
    out3 = jax.block_until_ready(concat_pallas([z1, z2], axis=1))
    ref3 = jnp.concatenate([z1, z2], axis=1)
    assert bool(jnp.array_equal(out3, ref3)), "Pallas concat mismatch (test 3)"

    # Test 4: tiny batch-2 inputs through the module with the default byte
    # threshold (routes to XLA's fused concat; checks torch.cat semantics).
    w1 = jax.random.normal(k8, (2, 4, 16, 16), dtype=jnp.float32)
    w2 = jax.random.normal(k9, (2, 6, 16, 16), dtype=jnp.float32)
    out4 = jax.block_until_ready(Concat(dimension=1)([w1, w2]))
    ref4 = jnp.concatenate([w1, w2], axis=1)
    assert out4.shape == (2, 10, 16, 16), out4.shape
    assert bool(jnp.array_equal(out4, ref4)), "concat mismatch (test 4)"

    print("KERNEL_OK")
</pallas_src>

<mosaic_0001>
module attributes {stable_mosaic.version = 11 : i64} {
  func.func @_concat_rows_kernel(%arg0: i32, %arg1: memref<8x1024xf32, #tpu.memory_space<vmem>>, %arg2: memref<8x1536xf32, #tpu.memory_space<vmem>>, %arg3: memref<8x512xf32, #tpu.memory_space<vmem>>, %arg4: memref<8x3072xf32, #tpu.memory_space<vmem>>) attributes {dimension_semantics = [#tpu.dimension_semantics<parallel>], iteration_bounds = array<i64: 1>, scalar_prefetch = 0 : i64, scratch_operands = 0 : i64, tpu.core_type = #tpu.core_type<tc>, window_params = [{transform_indices = @transform_0, window_bounds = array<i64: 8, 1024>}, {transform_indices = @transform_1, window_bounds = array<i64: 8, 1536>}, {transform_indices = @transform_2, window_bounds = array<i64: 8, 512>}, {transform_indices = @transform_3, window_bounds = array<i64: 8, 3072>}]} {
    %c0 = arith.constant 0 : index
    %c0_0 = arith.constant 0 : index
    %0 = vector.load %arg1[%c0, %c0_0] : memref<8x1024xf32, #tpu.memory_space<vmem>>, vector<8x1024xf32>
    %c0_1 = arith.constant 0 : index
    %c0_2 = arith.constant 0 : index
    %1 = vector.load %arg4[%c0_1, %c0_2] : memref<8x3072xf32, #tpu.memory_space<vmem>>, vector<8x1024xf32>
    tpu.vector_store %arg4[%c0_1, %c0_2], %0 {strides = array<i32>} : memref<8x3072xf32, #tpu.memory_space<vmem>>, vector<8x1024xf32>,
    %c0_3 = arith.constant 0 : index
    %c0_4 = arith.constant 0 : index
    %2 = vector.load %arg2[%c0_3, %c0_4] : memref<8x1536xf32, #tpu.memory_space<vmem>>, vector<8x1536xf32>
    %c0_5 = arith.constant 0 : index
    %c1024 = arith.constant 1024 : index
    %3 = vector.load %arg4[%c0_5, %c1024] : memref<8x3072xf32, #tpu.memory_space<vmem>>, vector<8x1536xf32>
    tpu.vector_store %arg4[%c0_5, %c1024], %2 {strides = array<i32>} : memref<8x3072xf32, #tpu.memory_space<vmem>>, vector<8x1536xf32>,
    %c0_6 = arith.constant 0 : index
    %c0_7 = arith.constant 0 : index
    %4 = vector.load %arg3[%c0_6, %c0_7] : memref<8x512xf32, #tpu.memory_space<vmem>>, vector<8x512xf32>
    %c0_8 = arith.constant 0 : index
    %c2560 = arith.constant 2560 : index
    %5 = vector.load %arg4[%c0_8, %c2560] : memref<8x3072xf32, #tpu.memory_space<vmem>>, vector<8x512xf32>
    tpu.vector_store %arg4[%c0_8, %c2560], %4 {strides = array<i32>} : memref<8x3072xf32, #tpu.memory_space<vmem>>, vector<8x512xf32>,
    return
  }
  func.func @transform_0(%arg0: i32) -> (i32, i32) {
    %c0_i32 = arith.constant 0 : i32
    %c0_i32_0 = arith.constant 0 : i32
    return %arg0, %c0_i32 : i32, i32
  }
  func.func @transform_1(%arg0: i32) -> (i32, i32) {
    %c0_i32 = arith.constant 0 : i32
    %c0_i32_0 = arith.constant 0 : i32
    return %arg0, %c0_i32 : i32, i32
  }
  func.func @transform_2(%arg0: i32) -> (i32, i32) {
    %c0_i32 = arith.constant 0 : i32
    %c0_i32_0 = arith.constant 0 : i32
    return %arg0, %c0_i32 : i32, i32
  }
  func.func @transform_3(%arg0: i32) -> (i32, i32) {
    %c0_i32 = arith.constant 0 : i32
    %c0_i32_0 = arith.constant 0 : i32
    return %arg0, %c0_i32 : i32, i32
  }
}

</mosaic_0001>

<bundles_post_ra>
// kernel: tpu_custom_call.1
= control target key start
LH: loop header
LB: loop body
LE: loop exit
PB: predicated region body
PF: predicated region fallthrough
CT: control target
= control target key end

     0   :  { %8 = vsyncpa [#allocation3], 0  ;;  %s240_s0 = inlined_call_operand.hbm [shape: f32[8,1024], index: 0, kind: input, shape index: {}]   ;;  %s241_s1 = inlined_call_operand.hbm [shape: f32[8,1536], index: 1, kind: input, shape index: {}]   ;;  %s242_s2 = inlined_call_operand.hbm [shape: f32[8,512], index: 2, kind: input, shape index: {}]   ;;  %s243_s3 = inlined_call_operand.hbm [shape: f32[8,3072], index: 3, kind: output, shape index: {}]  }
   0x1   :  { %9 = vsyncpa [#allocation6], 0 }
   0x2   :  { %10 = vsyncpa [#allocation4], 0  ;;  %s204_s12 = smov [#allocation5]   ;;  %s205_s14 = smov [#allocation2]  }
   0x3   :  { %s27_s13 = sshll.u32 %s204_s12, 4  ;;  %s17_s15 = sshll.u32 %s205_s14, 4  ;;  %s28_s13 = int_to_ptr.vmem [resolvable:$true] %s27_s13  ;;  %s18_s15 = int_to_ptr.vmem [resolvable:$true] %s17_s15 }
   0x4   :  { %s126_s16 = scalar_lea.vmem %s28_s13, 1536  ;;  %p131_p1 = scmp.lt.s32.totalorder %s28_s13, %s28_s13 }
   0x5   :  { %p127_p0 = scmp.ne.s32.totalorder %s28_s13, %s126_s16  ;;  %p132_p2 = scmp.lt.s32.totalorder %s126_s16, %s126_s16 }
   0x7   :  { %p133_p3 = por %p132_p2, %p131_p1 }
   0x9   :  { %p134_p4 = pnand %p133_p3, %p127_p0 }
   0xb   :  { %137 = shalt.err (!%p134_p4)
}
   0xc   :  { %30 = dma.hbm_to_vmem [thread:$0]  %s241_s1, 1536, %s28_s13, [#allocation6]  }
   0xd   :  { %s146_s19 = scalar_lea.vmem %s18_s15, 1024  ;;  %p151_p6 = scmp.lt.s32.totalorder %s18_s15, %s18_s15 }
   0xe   :  { %p147_p5 = scmp.ne.s32.totalorder %s18_s15, %s146_s19  ;;  %p152_p7 = scmp.lt.s32.totalorder %s146_s19, %s146_s19 }
  0x10   :  { %p153_p8 = por %p152_p7, %p151_p6 }
  0x12   :  { %p154_p9 = pnand %p153_p8, %p147_p5 }
  0x14   :  { %157 = shalt.err (!%p154_p9)
}
  0x15   :  { %20 = dma.hbm_to_vmem [thread:$0]  %s240_s0, 1024, %s18_s15, [#allocation3]  }
  0x16   :  { %s206_s22 = smov [#allocation7]  }
  0x17   :  { %s37_s23 = sshll.u32 %s206_s22, 4  ;;  %s38_s23 = int_to_ptr.vmem [resolvable:$true] %s37_s23 }
  0x18   :  { %s166_s24 = scalar_lea.vmem %s38_s23, 512  ;;  %p171_p11 = scmp.lt.s32.totalorder %s38_s23, %s38_s23 }
  0x19   :  { %p167_p10 = scmp.ne.s32.totalorder %s38_s23, %s166_s24  ;;  %p172_p12 = scmp.lt.s32.totalorder %s166_s24, %s166_s24 }
  0x1b   :  { %p173_p13 = por %p172_p12, %p171_p11 }
  0x1d   :  { %p174_p0 = pnand %p173_p13, %p167_p10 }
  0x1f   :  { %177 = shalt.err (!%p174_p0)
}
  0x20   :  { %40 = dma.hbm_to_vmem [thread:$0]  %s242_s2, 512, %s38_s23, [#allocation6]  }
  0x21   :  { %198 = dma.done.wait [#allocation3], 1024  }
  0x22   :  { %199 = vsyncadd [#allocation3], 4294966272 }
  0x23   :  { %200 = dma.done.wait [#allocation6], 2048  }
  0x24   :  { %201 = vsyncadd [#allocation6], 4294965248  ;;  %v50_v0 = vld [vmem:[#allocation2] sm:$0xff]  ;;  %v51_v1 = vld [vmem:[#allocation2 + $0x8] sm:$0xff]  ;;  %s207_s0 = smov [#allocation8]  }
  0x25   :  { %v52_v2 = vld [vmem:[#allocation2 + $0x10] sm:$0xff]  ;;  %58 = vst [vmem:[#allocation8] sm:$0xff] %v50_v0  ;;  %59 = vst [vmem:[#allocation8 + $0x8] sm:$0xff] %v51_v1  ;;  %v53_v3 = vld [vmem:[#allocation2 + $0x18] sm:$0xff]  ;;  %s104_s2 = sshll.u32 %s207_s0, 4  ;;  %s105_s2 = int_to_ptr.vmem [resolvable:$true] %s104_s2 }
  0x26   :  { %60 = vst [vmem:[#allocation8 + $0x10] sm:$0xff] %v52_v2  ;;  %v54_v4 = vld [vmem:[#allocation2 + $0x20] sm:$0xff]  ;;  %v55_v5 = vld [vmem:[#allocation2 + $0x28] sm:$0xff]  ;;  %61 = vst [vmem:[#allocation8 + $0x18] sm:$0xff] %v53_v3  ;;  %s178_s26 = scalar_lea.vmem %s105_s2, 3072  ;;  %p183_p2 = scmp.lt.s32.totalorder %s105_s2, %s105_s2 }
  0x27   :  { %62 = vst [vmem:[#allocation8 + $0x20] sm:$0xff] %v54_v4  ;;  %63 = vst [vmem:[#allocation8 + $0x28] sm:$0xff] %v55_v5  ;;  %v56_v6 = vld [vmem:[#allocation2 + $0x30] sm:$0xff]  ;;  %v57_v7 = vld [vmem:[#allocation2 + $0x38] sm:$0xff]  ;;  %p179_p1 = scmp.ne.s32.totalorder %s105_s2, %s178_s26  ;;  %p184_p3 = scmp.lt.s32.totalorder %s178_s26, %s178_s26 }
  0x28   :  { %v66_v8 = vld [vmem:[#allocation5] sm:$0xff]  ;;  %64 = vst [vmem:[#allocation8 + $0x30] sm:$0xff] %v56_v6  ;;  %65 = vst [vmem:[#allocation8 + $0x38] sm:$0xff] %v57_v7  ;;  %v67_v9 = vld [vmem:[#allocation5 + $0x8] sm:$0xff] }
  0x29   :  { %78 = vst [vmem:[#allocation8 + $0x40] sm:$0xff] %v66_v8  ;;  %v68_v10 = vld [vmem:[#allocation5 + $0x10] sm:$0xff]  ;;  %v69_v11 = vld [vmem:[#allocation5 + $0x18] sm:$0xff]  ;;  %79 = vst [vmem:[#allocation8 + $0x48] sm:$0xff] %v67_v9  ;;  %p185_p4 = por %p184_p3, %p183_p2 }
  0x2a   :  { %80 = vst [vmem:[#allocation8 + $0x50] sm:$0xff] %v68_v10  ;;  %81 = vst [vmem:[#allocation8 + $0x58] sm:$0xff] %v69_v11  ;;  %v70_v12 = vld [vmem:[#allocation5 + $0x20] sm:$0xff]  ;;  %v71_v13 = vld [vmem:[#allocation5 + $0x28] sm:$0xff] }
  0x2b   :  { %v72_v14 = vld [vmem:[#allocation5 + $0x30] sm:$0xff]  ;;  %82 = vst [vmem:[#allocation8 + $0x60] sm:$0xff] %v70_v12  ;;  %83 = vst [vmem:[#allocation8 + $0x68] sm:$0xff] %v71_v13  ;;  %v73_v15 = vld [vmem:[#allocation5 + $0x38] sm:$0xff]  ;;  %p186_p5 = pnand %p185_p4, %p179_p1 }
  0x2c   :  { %84 = vst [vmem:[#allocation8 + $0x70] sm:$0xff] %v72_v14  ;;  %v74_v16 = vld [vmem:[#allocation5 + $0x40] sm:$0xff]  ;;  %v75_v17 = vld [vmem:[#allocation5 + $0x48] sm:$0xff]  ;;  %85 = vst [vmem:[#allocation8 + $0x78] sm:$0xff] %v73_v15 }
  0x2d   :  { %86 = vst [vmem:[#allocation8 + $0x80] sm:$0xff] %v74_v16  ;;  %87 = vst [vmem:[#allocation8 + $0x88] sm:$0xff] %v75_v17  ;;  %v76_v18 = vld [vmem:[#allocation5 + $0x50] sm:$0xff]  ;;  %v77_v19 = vld [vmem:[#allocation5 + $0x58] sm:$0xff] }
  0x2e   :  { %v90_v20 = vld [vmem:[#allocation7] sm:$0xff]  ;;  %88 = vst [vmem:[#allocation8 + $0x90] sm:$0xff] %v76_v18  ;;  %89 = vst [vmem:[#allocation8 + $0x98] sm:$0xff] %v77_v19  ;;  %v91_v21 = vld [vmem:[#allocation7 + $0x8] sm:$0xff] }
  0x2f   :  { %94 = vst [vmem:[#allocation8 + $0xa0] sm:$0xff] %v90_v20  ;;  %v92_v22 = vld [vmem:[#allocation7 + $0x10] sm:$0xff]  ;;  %v93_v23 = vld [vmem:[#allocation7 + $0x18] sm:$0xff]  ;;  %95 = vst [vmem:[#allocation8 + $0xa8] sm:$0xff] %v91_v21 }
  0x30   :  { %96 = vst [vmem:[#allocation8 + $0xb0] sm:$0xff] %v92_v22  ;;  %97 = vst [vmem:[#allocation8 + $0xb8] sm:$0xff] %v93_v23 }
  0x31   :  { %189 = shalt.err (!%p186_p5)
}
  0x32   :  { %107 = dma.vmem_to_hbm [thread:$0]  %s105_s2, 3072, %s243_s3, [#allocation4]  }
  0x33   :  { %202 = dma.done.wait [#allocation4], 3072  }
  0x34   :  { %203 = vsyncadd [#allocation4], 4294964224 }
  0x35   :  { %111 = vsyncpa [#allocation3], 1 }
  0x36   :  { %112 = vsyncpa [#allocation6], 1 }
  0x37   :  { %113 = vsyncpa [#allocation4], 1 }

</bundles_post_ra>
